<compile_context>
chip_gen: v7x
topology: tpu7x:2x2x1
jax: 0.10.0
libtpu: 0.0.40
codegen_flags: <defaults>
</compile_context>

<pallas_src>
from functools import partial
from math import sqrt

import jax
import jax.numpy as jnp
from jax import lax
from jax.experimental import pallas as pl
from jax.experimental.pallas import tpu as pltpu


def _equal_linear_kernel(x_ref, w_ref, b_ref, o_ref, *scratch,
                         scale, compute_dtype):
    # Accumulator is either a dedicated f32 VMEM scratch (low-precision
    # outputs) or the resident output block itself (f32 outputs).
    acc_ref = scratch[0] if scratch else o_ref
    k = pl.program_id(2)

    @pl.when(k == 0)
    def _():
        acc_ref[...] = jnp.zeros_like(acc_ref)

    x = x_ref[...]
    w = w_ref[...]
    if compute_dtype is not None:
        x = x.astype(compute_dtype)
        w = w.astype(compute_dtype)

    # x: (tm, tk), w: (tn, tk) in the stored (out, in) layout.
    # Contract the K axis of both (== x @ W.T) on the MXU; f32 accumulation.
    acc_ref[...] += lax.dot_general(
        x, w,
        dimension_numbers=(((1,), (1,)), ((), ())),
        preferred_element_type=jnp.float32)

    @pl.when(k == pl.num_programs(2) - 1)
    def _():
        # Fold the EqualLR scale here: x @ (s*W).T == s * (x @ W.T).
        o_ref[...] = (acc_ref[...] * scale + b_ref[...]).astype(o_ref.dtype)


def _round_up(v, m):
    return (v + m - 1) // m * m


def _pick_tm(batch, tm_max):
    """M tile: whole (8-aligned) batch if it fits in one tile, else the
    128-multiple candidate <= tm_max that minimizes batch padding."""
    b8 = _round_up(batch, 8)
    if b8 <= tm_max:
        return b8
    best_tm, best_waste = 128, None
    for cand in range((tm_max // 128) * 128, 127, -128):
        waste = _round_up(b8, cand) - b8
        if best_waste is None or waste < best_waste:
            best_tm, best_waste = cand, waste
    return best_tm


def _fit_tile(aligned_extent, t, unit=128):
    """Largest `unit`-multiple tile <= t that divides the aligned extent,
    so the tile choice never forces extra padding along that axis."""
    t = max(min(t, aligned_extent), unit)
    while aligned_extent % t:
        t -= unit
    return t


def equal_linear(x, weight_orig, bias, *, tm=512, tn=512, tk=1024,
                 compute_dtype=None):
    """x: (B, in_dim), weight_orig: (out_dim, in_dim), bias: (out_dim,)."""
    B, in_dim = x.shape
    out_dim, in_dim_w = weight_orig.shape
    assert in_dim == in_dim_w
    scale = sqrt(2.0 / in_dim)  # fan_in = in_dim for nn.Linear weights

    n_aligned = _round_up(out_dim, 128)
    k_aligned = _round_up(in_dim, 128)

    tm = _pick_tm(B, tm)
    tn = _fit_tile(n_aligned, tn)
    tk = _fit_tile(k_aligned, tk)

    # Megacore (v7x): if the batch collapses to a single M tile, split N so a
    # "parallel" grid axis still has >= 2 blocks (when 256-aligned).
    if _round_up(B, tm) // tm == 1 and tn >= n_aligned and n_aligned % 256 == 0:
        tn = n_aligned // 2

    pad_b = _round_up(B, tm)
    pad_n = n_aligned
    pad_k = k_aligned

    # Padding only happens when dims aren't already (8,128)-aligned; for
    # aligned production layers these are no-ops (and the weight is *not*
    # transposed in HBM in any case).
    # TODO(synk): for repeated inference calls, pad the weight once at
    # parameter-prep time and reuse it instead of padding per call.
    if pad_b != B or pad_k != in_dim:
        x = jnp.pad(x, ((0, pad_b - B), (0, pad_k - in_dim)))
    w = weight_orig
    if pad_n != out_dim or pad_k != in_dim:
        w = jnp.pad(w, ((0, pad_n - out_dim), (0, pad_k - in_dim)))
    b_pad = bias
    if pad_n != out_dim:
        b_pad = jnp.pad(b_pad, (0, pad_n - out_dim))
    bias_2d = b_pad.astype(jnp.float32).reshape(1, pad_n)

    grid = (pad_b // tm, pad_n // tn, pad_k // tk)

    # f32 outputs: accumulate directly into the resident output block.
    use_scratch = x.dtype != jnp.float32
    scratch_shapes = [pltpu.VMEM((tm, tn), jnp.float32)] if use_scratch else []

    # Deeper W pipeline when weight-streaming bound (tiny M tile, multi-K).
    w_spec_kwargs = {}
    w_bufs = 2
    if tm <= 64 and grid[2] >= 2:
        w_bufs = 3
        w_spec_kwargs["pipeline_mode"] = pl.Buffered(3)

    # Explicit VMEM budget (double-buffered tiles + acc), with headroom,
    # capped well under v7x's 64 MiB physical VMEM.
    x_item = jnp.dtype(x.dtype).itemsize
    w_item = jnp.dtype(weight_orig.dtype).itemsize
    est = (2 * tm * tk * x_item              # x tiles
           + w_bufs * tn * tk * w_item       # weight tiles
           + 2 * tm * tn * x_item            # output tiles
           + 2 * pad_n * 4                   # bias tiles
           + (tm * tn * 4 if use_scratch else 0))
    vmem_limit = int(min(max(est * 3 // 2, 16 * 2**20), 48 * 2**20))

    kernel = partial(_equal_linear_kernel, scale=scale,
                     compute_dtype=compute_dtype)

    out_padded = pl.pallas_call(
        kernel,
        out_shape=jax.ShapeDtypeStruct((pad_b, pad_n), x.dtype),
        grid_spec=pltpu.PrefetchScalarGridSpec(
            num_scalar_prefetch=0,
            grid=grid,
            in_specs=[
                pl.BlockSpec((tm, tk), lambda i, j, k: (i, k)),   # x tile
                pl.BlockSpec((tn, tk), lambda i, j, k: (j, k),    # W tile
                             **w_spec_kwargs),                    #   (stored layout)
                pl.BlockSpec((1, tn), lambda i, j, k: (0, j)),    # bias tile
            ],
            out_specs=pl.BlockSpec((tm, tn), lambda i, j, k: (i, j)),
            scratch_shapes=scratch_shapes,
        ),
        compiler_params=pltpu.CompilerParams(
            # batch / out_dim parallel (v7x 2-TC sharding), K reduction
            # arbitrary (accumulator carried across it).
            dimension_semantics=("parallel", "parallel", "arbitrary"),
            vmem_limit_bytes=vmem_limit,
        ),
    )(x, w, bias_2d)

    return out_padded[:B, :out_dim]


if __name__ == "__main__":
    key = jax.random.PRNGKey(0)
    k_x, k_w = jax.random.split(key)

    batch, in_dim, out_dim = 8, 32, 64

    x = jax.random.normal(k_x, (batch, in_dim), dtype=jnp.float32)
    # __init__: linear.weight.data.normal_(), linear.bias.data.zero_()
    weight_orig = jax.random.normal(k_w, (out_dim, in_dim), dtype=jnp.float32)
    bias = jnp.zeros((out_dim,), dtype=jnp.float32)

    out = equal_linear(x, weight_orig, bias)
    jax.block_until_ready(out)

    # Reference check (plain JAX) for the EqualLR-scaled linear.
    ref = x @ (weight_orig * sqrt(2.0 / in_dim)).T + bias
    assert out.shape == (batch, out_dim)
    assert jnp.allclose(out, ref, atol=1e-5, rtol=1e-5)

    print("KERNEL_OK")
</pallas_src>

<mosaic_0001>
module attributes {stable_mosaic.version = 11 : i64} {
  func.func @_equal_linear_kernel(%arg0: i32, %arg1: i32, %arg2: i32, %arg3: memref<8x128xf32, #tpu.memory_space<vmem>>, %arg4: memref<128x128xf32, #tpu.memory_space<vmem>>, %arg5: memref<1x128xf32, #tpu.memory_space<vmem>>, %arg6: memref<8x128xf32, #tpu.memory_space<vmem>>) attributes {dimension_semantics = [#tpu.dimension_semantics<parallel>, #tpu.dimension_semantics<parallel>, #tpu.dimension_semantics<arbitrary>], iteration_bounds = array<i64: 1, 1, 1>, scalar_prefetch = 0 : i64, scratch_operands = 0 : i64, tpu.core_type = #tpu.core_type<tc>, window_params = [{transform_indices = @transform_0, window_bounds = array<i64: 8, 128>}, {transform_indices = @transform_1, window_bounds = array<i64: 128, 128>}, {transform_indices = @transform_2, window_bounds = array<i64: 1, 128>}, {transform_indices = @transform_3, window_bounds = array<i64: 8, 128>}]} {
    %c0_i32 = arith.constant 0 : i32
    %0 = arith.cmpi eq, %arg2, %c0_i32 : i32
    %1 = arith.extui %0 : i1 to i32
    %c0_i32_0 = arith.constant 0 : i32
    %2 = arith.cmpi ne, %1, %c0_i32_0 : i32
    scf.if %2 {
      %cst_10 = arith.constant 0.000000e+00 : f32
      %12 = vector.broadcast %cst_10 : f32 to vector<8x128xf32>
      %c0_11 = arith.constant 0 : index
      %c0_12 = arith.constant 0 : index
      %13 = vector.load %arg6[%c0_11, %c0_12] : memref<8x128xf32, #tpu.memory_space<vmem>>, vector<8x128xf32>
      tpu.vector_store %arg6[%c0_11, %c0_12], %12 {strides = array<i32>} : memref<8x128xf32, #tpu.memory_space<vmem>>, vector<8x128xf32>,
    } else {
    }
    %c0 = arith.constant 0 : index
    %c0_1 = arith.constant 0 : index
    %3 = vector.load %arg3[%c0, %c0_1] : memref<8x128xf32, #tpu.memory_space<vmem>>, vector<8x128xf32>
    %c0_2 = arith.constant 0 : index
    %c0_3 = arith.constant 0 : index
    %4 = vector.load %arg4[%c0_2, %c0_3] : memref<128x128xf32, #tpu.memory_space<vmem>>, vector<128x128xf32>
    %c0_4 = arith.constant 0 : index
    %c0_5 = arith.constant 0 : index
    %5 = vector.load %arg6[%c0_4, %c0_5] : memref<8x128xf32, #tpu.memory_space<vmem>>, vector<8x128xf32>
    %cst = arith.constant dense<0.000000e+00> : vector<8x128xf32>
    %6 = tpu.matmul %3, %4, %cst {dimension_numbers = #tpu.dot_dimension_numbers<[1], [1], [0], [0], [0, 0, 1, 0], [], []>} : vector<8x128xf32>, vector<128x128xf32>, vector<8x128xf32> -> vector<8x128xf32>
    %7 = arith.addf %5, %6 : vector<8x128xf32>
    %c0_6 = arith.constant 0 : index
    %c0_7 = arith.constant 0 : index
    %8 = vector.load %arg6[%c0_6, %c0_7] : memref<8x128xf32, #tpu.memory_space<vmem>>, vector<8x128xf32>
    tpu.vector_store %arg6[%c0_6, %c0_7], %7 {strides = array<i32>} : memref<8x128xf32, #tpu.memory_space<vmem>>, vector<8x128xf32>,
    %c0_i32_8 = arith.constant 0 : i32
    %9 = arith.cmpi eq, %arg2, %c0_i32_8 : i32
    %10 = arith.extui %9 : i1 to i32
    %c0_i32_9 = arith.constant 0 : i32
    %11 = arith.cmpi ne, %10, %c0_i32_9 : i32
    scf.if %11 {
      %c0_10 = arith.constant 0 : index
      %c0_11 = arith.constant 0 : index
      %12 = vector.load %arg6[%c0_10, %c0_11] : memref<8x128xf32, #tpu.memory_space<vmem>>, vector<8x128xf32>
      %cst_12 = arith.constant 2.500000e-01 : f32
      %13 = vector.broadcast %cst_12 : f32 to vector<8x128xf32>
      %14 = arith.mulf %12, %13 : vector<8x128xf32>
      %c0_13 = arith.constant 0 : index
      %c0_14 = arith.constant 0 : index
      %15 = vector.load %arg5[%c0_13, %c0_14] : memref<1x128xf32, #tpu.memory_space<vmem>>, vector<1x128xf32>
      %16 = vector.broadcast %15 : vector<1x128xf32> to vector<8x128xf32>
      %17 = arith.addf %14, %16 : vector<8x128xf32>
      %c0_15 = arith.constant 0 : index
      %c0_16 = arith.constant 0 : index
      %18 = vector.load %arg6[%c0_15, %c0_16] : memref<8x128xf32, #tpu.memory_space<vmem>>, vector<8x128xf32>
      tpu.vector_store %arg6[%c0_15, %c0_16], %17 {strides = array<i32>} : memref<8x128xf32, #tpu.memory_space<vmem>>, vector<8x128xf32>,
    } else {
    }
    return
  }
  func.func @transform_0(%arg0: i32, %arg1: i32, %arg2: i32) -> (i32, i32) {
    %c0_i32 = arith.constant 0 : i32
    return %arg0, %arg2 : i32, i32
  }
  func.func @transform_1(%arg0: i32, %arg1: i32, %arg2: i32) -> (i32, i32) {
    %c0_i32 = arith.constant 0 : i32
    return %arg1, %arg2 : i32, i32
  }
  func.func @transform_2(%arg0: i32, %arg1: i32, %arg2: i32) -> (i32, i32) {
    %c0_i32 = arith.constant 0 : i32
    %c0_i32_0 = arith.constant 0 : i32
    return %c0_i32, %arg1 : i32, i32
  }
  func.func @transform_3(%arg0: i32, %arg1: i32, %arg2: i32) -> (i32, i32) {
    %c0_i32 = arith.constant 0 : i32
    return %arg0, %arg1 : i32, i32
  }
}

</mosaic_0001>

<bundles_post_ra>
// kernel: tpu_custom_call.1
= control target key start
LH: loop header
LB: loop body
LE: loop exit
PB: predicated region body
PF: predicated region fallthrough
CT: control target
= control target key end

     0   :  { %8 = vsyncpa [#allocation3], 0  ;;  %s397_s0 = inlined_call_operand.hbm [shape: f32[8,128], index: 0, kind: input, shape index: {}]   ;;  %s398_s1 = inlined_call_operand.hbm [shape: f32[128,128], index: 1, kind: input, shape index: {}]   ;;  %s399_s2 = inlined_call_operand.vmem [shape: f32[1,128], index: 2, kind: input, shape index: {}]   ;;  %s400_s3 = inlined_call_operand.hbm [shape: f32[8,128], index: 3, kind: output, shape index: {}]  }
   0x1   :  { %9 = vsyncpa [#allocation6], 0 }
   0x2   :  { %10 = vsyncpa [#allocation4], 0  ;;  %s323_s12 = smov [#allocation2]   ;;  %s324_s14 = smov [#allocation5]  }
   0x3   :  { %s17_s13 = sshll.u32 %s323_s12, 4  ;;  %s26_s15 = sshll.u32 %s324_s14, 4  ;;  %s18_s13 = int_to_ptr.vmem [resolvable:$true] %s17_s13  ;;  %s351_s15 = int_to_ptr.vmem [resolvable:$true] %s26_s15 }
   0x4   :  { %s251_s18 = scalar_lea.hbm %s397_s0, 128 }
   0x5   :  { %p252_p0 = scmp.ne.s32.totalorder %s397_s0, %s251_s18  ;;  %p255_p1 = scmp.lt.u32.totalorder %s251_s18, %s397_s0 }
   0x7   :  { %p257_p2 = pnand %p255_p1, %p252_p0 }
   0x9   :  { %260 = shalt.err (!%p257_p2)
}
   0xa   :  { %s261_s23 = scalar_lea.vmem %s18_s13, 128  ;;  %p266_p4 = scmp.lt.s32.totalorder %s18_s13, %s18_s13 }
   0xb   :  { %p262_p3 = scmp.ne.s32.totalorder %s18_s13, %s261_s23  ;;  %p267_p5 = scmp.lt.s32.totalorder %s261_s23, %s261_s23 }
   0xd   :  { %p268_p6 = por %p267_p5, %p266_p4 }
   0xf   :  { %p269_p7 = pnand %p268_p6, %p262_p3 }
  0x11   :  { %272 = shalt.err (!%p269_p7)
}
  0x12   :  { %20 = dma.hbm_to_vmem [thread:$0]  %s397_s0, 128, %s18_s13, [#allocation3]  }
  0x13   :  { %s273_s28 = scalar_lea.hbm %s398_s1, 2048 }
  0x14   :  { %p274_p8 = scmp.ne.s32.totalorder %s398_s1, %s273_s28  ;;  %p277_p9 = scmp.lt.u32.totalorder %s273_s28, %s398_s1 }
  0x16   :  { %p279_p10 = pnand %p277_p9, %p274_p8 }
  0x18   :  { %282 = shalt.err (!%p279_p10)
}
  0x19   :  { %s283_s6 = scalar_lea.vmem %s351_s15, 2048  ;;  %p288_p12 = scmp.lt.s32.totalorder %s351_s15, %s351_s15 }
  0x1a   :  { %p284_p11 = scmp.ne.s32.totalorder %s351_s15, %s283_s6  ;;  %p289_p13 = scmp.lt.s32.totalorder %s283_s6, %s283_s6 }
  0x1c   :  { %p290_p0 = por %p289_p13, %p288_p12 }
  0x1e   :  { %p291_p1 = pnand %p290_p0, %p284_p11 }
  0x20   :  { %294 = shalt.err (!%p291_p1)
}
  0x21   :  { %s325_s0 = smov 128   ;;  %s326_s7 = smov 8  }
  0x22   :  { %32 = dma.hbm_to_vmem [thread:$0]  %s398_s1, 2048, %s351_s15, [#allocation6], %s325_s0, %s325_s0, %s326_s7  }
  0x23   :  { %317 = dma.done.wait [#allocation3], 128  }
  0x24   :  { %318 = vsyncadd [#allocation3], 4294967168 }
  0x25   :  { %319 = dma.done.wait [#allocation6], 2048  }
  0x26   :  { %320 = vsyncadd [#allocation6], 4294965248  ;;  %v327_v0 = vmov 0.0|0.0   ;;  %vm328_vm0 = vmmov 0   ;;  %v329_v1 = vmov 0.0   ;;  %v47_v2 = vld [vmem:[#allocation5] sm:$0xff] }
  0x27   :  { %219 = vmatprep.subr.bf16.mxu0 %v327_v0  ;;  %216 = vmatprep.mubr.msk.f32.mxu0 %vm328_vm0, %v329_v1  ;;  %v48_v3 = vld [vmem:[#allocation5 + $0x8] sm:$0xff]  ;;  %v49_v5 = vld [vmem:[#allocation5 + $0x10] sm:$0xff]  ;;  %v50_v6 = vld [vmem:[#allocation5 + $0x18] sm:$0xff]  ;;  %s330_s11 = smov [#allocation7]  }
  0x28   :  { %v220_v4 = vpack.c.bf16 %v48_v3, %v47_v2  ;;  %v223_v7 = vpack.c.bf16 %v50_v6, %v49_v5  ;;  %v51_v8 = vld [vmem:[#allocation5 + $0x20] sm:$0xff]  ;;  %v52_v9 = vld [vmem:[#allocation5 + $0x28] sm:$0xff]  ;;  %v53_v11 = vld [vmem:[#allocation5 + $0x30] sm:$0xff]  ;;  %s156_s12 = sshll.u32 %s330_s11, 4  ;;  %s157_s12 = int_to_ptr.vmem [resolvable:$true] %s156_s12 }
  0x29   :  { %v226_v10 = vpack.c.bf16 %v52_v9, %v51_v8  ;;  %v54_v12 = vld [vmem:[#allocation5 + $0x38] sm:$0xff]  ;;  %v55_v14 = vld [vmem:[#allocation5 + $0x40] sm:$0xff]  ;;  %v56_v15 = vld [vmem:[#allocation5 + $0x48] sm:$0xff]  ;;  %s295_s13 = scalar_lea.vmem %s157_s12, 128  ;;  %p300_p3 = scmp.lt.s32.totalorder %s157_s12, %s157_s12 }
  0x2a   :  { %221 = vmatpush3.bf16.xpose.msra.mxu0 %v220_v4  ;;  %v229_v13 = vpack.c.bf16 %v54_v12, %v53_v11  ;;  %v232_v16 = vpack.c.bf16 %v56_v15, %v55_v14  ;;  %v57_v17 = vld [vmem:[#allocation5 + $0x50] sm:$0xff]  ;;  %v58_v18 = vld [vmem:[#allocation5 + $0x58] sm:$0xff]  ;;  %v59_v20 = vld [vmem:[#allocation5 + $0x60] sm:$0xff]  ;;  %p296_p2 = scmp.ne.s32.totalorder %s157_s12, %s295_s13  ;;  %p301_p4 = scmp.lt.s32.totalorder %s295_s13, %s295_s13 }
  0x2b   :  { %222 = vmatprep.subr.bf16.mxu0 %v327_v0  ;;  %v235_v19 = vpack.c.bf16 %v58_v18, %v57_v17  ;;  %v60_v21 = vld [vmem:[#allocation5 + $0x68] sm:$0xff]  ;;  %v61_v23 = vld [vmem:[#allocation5 + $0x70] sm:$0xff]  ;;  %v62_v24 = vld [vmem:[#allocation5 + $0x78] sm:$0xff] }
  0x2c   :  { %v238_v22 = vpack.c.bf16 %v60_v21, %v59_v20  ;;  %v241_v25 = vpack.c.bf16 %v62_v24, %v61_v23  ;;  %v46_v26 = vld [vmem:[#allocation2] sm:$0xff]  ;;  %p302_p5 = por %p301_p4, %p300_p3 }
  0x2d   :  { %v166_v29 = vld [vmem:[%s399_s2] ss:$0 sm:$0xff] }
  0x2e   :  { %p303_p6 = pnand %p302_p5, %p296_p2 }
  0x32   :  { %224 = vmatpush3.bf16.xpose.msra.mxu0 %v223_v7 }
  0x33   :  { %225 = vmatprep.subr.bf16.mxu0 %v327_v0 }
  0x3a   :  { %227 = vmatpush3.bf16.xpose.msra.mxu0 %v226_v10 }
  0x3b   :  { %228 = vmatprep.subr.bf16.mxu0 %v327_v0 }
  0x42   :  { %230 = vmatpush3.bf16.xpose.msra.mxu0 %v229_v13 }
  0x43   :  { %231 = vmatprep.subr.bf16.mxu0 %v327_v0 }
  0x4a   :  { %233 = vmatpush3.bf16.xpose.msra.mxu0 %v232_v16 }
  0x4b   :  { %234 = vmatprep.subr.bf16.mxu0 %v327_v0 }
  0x52   :  { %236 = vmatpush3.bf16.xpose.msra.mxu0 %v235_v19 }
  0x53   :  { %237 = vmatprep.subr.bf16.mxu0 %v327_v0 }
  0x5a   :  { %239 = vmatpush3.bf16.xpose.msra.mxu0 %v238_v22 }
  0x5b   :  { %240 = vmatprep.subr.bf16.mxu0 %v327_v0 }
  0x62   :  { %242 = vmatpush3.bf16.xpose.msra.mxu0 %v241_v25 }
  0x69   :  { %217 = vmatmul.mubr.f32.vlgmr.msra.gmra.mrb[0].mxu0 %v46_v26 }
 0x13c   :  { %v130_v27 = vpop.f32.mrb[0].mxu0 }
 0x13d   :  { %v218_v28 = vpop.f32.mrb[1].mxu0  ;;  %v140_v30 = vmul.f32 0.25, %v130_v27 }
 0x13f   :  { %v148_v31 = vadd.f32 %v166_v29, %v140_v30 }
 0x141   :  { %149 = vst [vmem:[#allocation7] sm:$0xff] %v148_v31 }
 0x142   :  { %306 = shalt.err (!%p303_p6)
}
 0x143   :  { %s307_s16 = scalar_lea.hbm %s400_s3, 128 }
 0x144   :  { %p308_p7 = scmp.ne.s32.totalorder %s400_s3, %s307_s16  ;;  %p311_p8 = scmp.lt.u32.totalorder %s307_s16, %s400_s3 }
 0x146   :  { %p313_p9 = pnand %p311_p8, %p308_p7 }
 0x148   :  { %316 = shalt.err (!%p313_p9)
}
 0x149   :  { %159 = dma.vmem_to_hbm [thread:$0]  %s157_s12, 128, %s400_s3, [#allocation4]  }
 0x14a   :  { %321 = dma.done.wait [#allocation4], 128  }
 0x14b   :  { %322 = vsyncadd [#allocation4], 4294967168 }
 0x14c   :  { %163 = vsyncpa [#allocation3], 1 }
 0x14d   :  { %164 = vsyncpa [#allocation6], 1 }
 0x14e   :  { %165 = vsyncpa [#allocation4], 1 }

</bundles_post_ra>
